<compile_context>
chip_gen: v6e
topology: v6e:2x2x1
jax: 0.10.0
libtpu: 0.0.40
codegen_flags: <defaults>
</compile_context>

<pallas_src>
import jax
import jax.numpy as jnp
from jax import lax
from jax.experimental import pallas as pl
from jax.experimental.pallas import tpu as pltpu

NOISE_GATE_LINEAR = 1e-3          # 20*log10(clamp(x,1e-8)) > -60 dB  <=>  x > 1e-3
NOISE_GATE_RATIO = 0.1
COMPRESSION_RATIO = 0.3
COMPRESSION_THRESHOLD = 0.7
ALPHA = 0.3
_BIG = 3.0e38


def _round_up(x, m):
    return ((x + m - 1) // m) * m


def _pick_time_tile(t_pad, target=512):
    """Largest multiple of 128 <= target that divides t_pad."""
    best = 128
    cand = 128
    while cand <= min(t_pad, target):
        if t_pad % cand == 0:
            best = cand
        cand += 128
    return best


def _vmem_limit_bytes(c_pad, tt):
    tile = c_pad * tt * 4
    est = 16 * tile + 6 * c_pad * c_pad + (4 << 20)
    cap = 32 << 20
    try:  # chip-aware cap (v7x has 64 MiB physical VMEM per TC)
        cap = min(cap, int(pltpu.get_tpu_info().vmem_capacity_bytes) // 2)
    except Exception:
        pass
    return int(min(max(est, 8 << 20), cap))


def _gate(v):
    # noise gate with the log10 removed algebraically
    return jnp.where(v > NOISE_GATE_LINEAR, v, v * (1.0 - NOISE_GATE_RATIO))


def _compress(v):
    return jnp.where(v > COMPRESSION_THRESHOLD,
                     COMPRESSION_THRESHOLD + (v - COMPRESSION_THRESHOLD) * COMPRESSION_RATIO,
                     v)


def _row_stats_slab(vals, colmask, mask_sums, extra=None):
    """Per-row partial stats of one tile -> (C_pad, 8): [sum, sumsq, max, min, diff, 0,0,0]."""
    v = jnp.where(colmask, vals, 0.0) if mask_sums else vals
    r_sum = jnp.sum(v, axis=1, keepdims=True)
    r_sumsq = jnp.sum(v * v, axis=1, keepdims=True)
    r_max = jnp.max(jnp.where(colmask, vals, -_BIG), axis=1, keepdims=True)
    r_min = jnp.min(jnp.where(colmask, vals, _BIG), axis=1, keepdims=True)
    z = jnp.zeros_like(r_sum)
    e = z if extra is None else extra
    return jnp.concatenate([r_sum, r_sumsq, r_max, r_min, e, z, z, z], axis=1)


# ----------------------------------------------------------------------------
# Fused kernel: noise gate -> band-split Conv1d (packed bf16 MXU matmul) -> compression,
# plus per-tile partial stats for both the original and the enhanced tensors.
# ----------------------------------------------------------------------------
def enhance_and_stats(mel_p, halo, w_eff, b_eff, C, T, tT):
    B, C_pad, T_pad = mel_p.shape
    nT = T_pad // tT

    def kernel(mel_ref, halo_ref, w_ref, b_ref, out_ref, so_ref, sf_ref):
        j = pl.program_id(1)
        x = mel_ref[0]                                           # (C_pad, tT) f32
        t_valid = jnp.minimum(T - j * tT, tT)                    # every tile has >=1 valid col
        col = lax.broadcasted_iota(jnp.int32, (C_pad, tT), 1)    # hoisted, reused everywhere
        colmask = col < t_valid

        # original per-row partial stats (T/C padding is exactly zero -> sums need no mask)
        so_ref[0, 0] = _row_stats_slab(x, colmask, mask_sums=False)

        # 1) noise gate
        gated = _gate(x)
        hcols = halo_ref[0, 0]                                   # (C_pad, 4): [x[js-1], x[je], x[je+1], 0]
        g_halo = _gate(hcols)

        # 2) spectral enhancer: all 3 bands x 3 taps in ONE packed bf16 MXU matmul (alpha and
        #    bias folded); one tiny matmul covers the 3 halo columns.
        y = jnp.dot(w_ref[...], gated.astype(jnp.bfloat16),
                    preferred_element_type=jnp.float32)          # (3*C_pad, tT) f32
        h = jnp.dot(w_ref[...], g_halo.astype(jnp.bfloat16),
                    preferred_element_type=jnp.float32)          # (3*C_pad, 4)  f32

        y_prev = y[0:C_pad]                                      # tap applied to x[t-1]
        y_cur = y[C_pad:2 * C_pad]                               # tap applied to x[t]
        y_next = y[2 * C_pad:3 * C_pad]                          # tap applied to x[t+1]
        w0_left = h[0:C_pad, 0:1]                                # prev-tap @ left halo  -> col 0
        w1_r1 = h[C_pad:2 * C_pad, 1:2]                          # cur-tap  @ right halo -> boundary col
        w2_r1 = h[2 * C_pad:3 * C_pad, 1:2]                      # next-tap @ right halo -> col tT-1
        w2_r2 = h[2 * C_pad:3 * C_pad, 2:3]                      # next-tap @ right halo2-> boundary col

        # time shifts via XLU roll; the wrapped edge column is replaced by the halo term
        prev_sh = jnp.where(col == 0, w0_left, pltpu.roll(y_prev, 1, axis=1))
        next_sh = jnp.where(col == tT - 1, w2_r1, pltpu.roll(y_next, tT - 1, axis=1))
        mixed = y_cur + prev_sh + next_sh + b_ref[...] + (1.0 - ALPHA) * gated

        # 3) dynamic range controller
        compressed = _compress(mixed)
        out_ref[0] = compressed

        # enhanced value of the NEXT tile's first column (exact cross-tile temporal diff)
        mixed_b = (y_prev[:, tT - 1:tT] + w1_r1 + w2_r2 + b_ref[...]
                   + (1.0 - ALPHA) * g_halo[:, 1:2])
        comp_b = _compress(mixed_b)

        has_boundary = (j + 1) * tT < T
        n_diff = (t_valid - 1) + has_boundary.astype(jnp.int32)
        nxt = jnp.where(col == tT - 1, comp_b, pltpu.roll(compressed, tT - 1, axis=1))
        r_diff = jnp.sum(jnp.where(col < n_diff, jnp.abs(compressed - nxt), 0.0),
                         axis=1, keepdims=True)

        # enhanced per-row partial stats (padded columns carry bias -> mask the sums)
        sf_ref[0, 0] = _row_stats_slab(compressed, colmask, mask_sums=True, extra=r_diff)

    return pl.pallas_call(
        kernel,
        out_shape=(jax.ShapeDtypeStruct((B, C_pad, T_pad), jnp.float32),
                   jax.ShapeDtypeStruct((B, nT, C_pad, 8), jnp.float32),
                   jax.ShapeDtypeStruct((B, nT, C_pad, 8), jnp.float32)),
        grid=(B, nT),
        in_specs=[pl.BlockSpec((1, C_pad, tT), lambda b, j: (b, 0, j)),
                  pl.BlockSpec((1, 1, C_pad, 4), lambda b, j: (b, j, 0, 0)),
                  pl.BlockSpec((3 * C_pad, C_pad), lambda b, j: (0, 0)),
                  pl.BlockSpec((C_pad, 1), lambda b, j: (0, 0))],
        out_specs=(pl.BlockSpec((1, C_pad, tT), lambda b, j: (b, 0, j)),
                   pl.BlockSpec((1, 1, C_pad, 8), lambda b, j: (b, j, 0, 0)),
                   pl.BlockSpec((1, 1, C_pad, 8), lambda b, j: (b, j, 0, 0))),
        compiler_params=pltpu.CompilerParams(
            dimension_semantics=("parallel", "parallel"),   # fully independent grid steps
            vmem_limit_bytes=_vmem_limit_bytes(C_pad, tT)),
    )(mel_p, halo, w_eff, b_eff)


# ----------------------------------------------------------------------------
# Stats-only kernel (apply_enhancement=False path).
# ----------------------------------------------------------------------------
def compute_stats(mel_p, T, tT):
    B, C_pad, T_pad = mel_p.shape
    nT = T_pad // tT

    def kernel(mel_ref, so_ref):
        j = pl.program_id(1)
        x = mel_ref[0]
        t_valid = jnp.minimum(T - j * tT, tT)
        col = lax.broadcasted_iota(jnp.int32, (C_pad, tT), 1)
        so_ref[0, 0] = _row_stats_slab(x, col < t_valid, mask_sums=False)

    return pl.pallas_call(
        kernel,
        out_shape=jax.ShapeDtypeStruct((B, nT, C_pad, 8), jnp.float32),
        grid=(B, nT),
        in_specs=[pl.BlockSpec((1, C_pad, tT), lambda b, j: (b, 0, j))],
        out_specs=pl.BlockSpec((1, 1, C_pad, 8), lambda b, j: (b, j, 0, 0)),
        compiler_params=pltpu.CompilerParams(
            dimension_semantics=("parallel", "parallel"),
            vmem_limit_bytes=_vmem_limit_bytes(C_pad, tT)),
    )(mel_p)


# ----------------------------------------------------------------------------
# Wrapper-side helpers.
# ----------------------------------------------------------------------------
def build_halo(mel_p, tT):
    """Boundary columns per tile: [left x[js-1], right x[je], right x[je+1], 0]."""
    B, C_pad, T_pad = mel_p.shape
    nT = T_pad // tT
    first = mel_p[:, :, ::tT]                      # col j -> x[:, j*tT]
    second = mel_p[:, :, 1::tT]                    # col j -> x[:, j*tT + 1]
    last = mel_p[:, :, tT - 1::tT]                 # col j -> x[:, j*tT + tT - 1]
    zero = jnp.zeros((B, C_pad, 1), jnp.float32)
    left1 = jnp.concatenate([zero, last[:, :, :nT - 1]], axis=2)
    right1 = jnp.concatenate([first[:, :, 1:], zero], axis=2)
    right2 = jnp.concatenate([second[:, :, 1:], zero], axis=2)
    halo = jnp.stack([left1, right1, right2, jnp.zeros_like(left1)], axis=-1)
    return jnp.transpose(halo, (0, 2, 1, 3))       # (B, nT, C_pad, 4)


def pack_conv_params(params, C, C_pad):
    """Block-diagonal (3*C_pad, C_pad) weight with alpha folded; tap k multiplies x[t-1+k]."""
    w_low, b_low, w_mid, b_mid, w_high, b_high = params     # PyTorch layout (Cout, Cin, 3), (Cout,)
    c4, c2 = C // 4, C // 2

    W = jnp.zeros((3 * C_pad, C_pad), jnp.float32)
    bias = jnp.zeros((C_pad, 1), jnp.float32)

    def place(W, w, off):
        cout, cin, _ = w.shape
        for k in range(3):
            W = W.at[k * C_pad + off:k * C_pad + off + cout, off:off + cin].set(w[:, :, k])
        return W

    W = place(W, w_low, 0)
    W = place(W, w_mid, c4)
    W = place(W, w_high, c4 + c2)
    bias = bias.at[0:c4, 0].set(b_low)
    bias = bias.at[c4:c4 + c2, 0].set(b_mid)
    bias = bias.at[c4 + c2:C, 0].set(b_high)

    w_eff = (ALPHA * W).astype(jnp.bfloat16)
    b_eff = (ALPHA * bias).astype(jnp.float32)
    return w_eff, b_eff


def _finalize_stats(slab, B, C, T, need_diff):
    """Reduce (B, nT, C_pad, 8) per-tile per-row partials to the scalar statistics."""
    s = slab[:, :, :C, :]
    row_sum = jnp.sum(s[..., 0], axis=1)          # (B, C)
    row_sumsq = jnp.sum(s[..., 1], axis=1)
    row_max = jnp.max(s[..., 2], axis=1)
    row_min = jnp.min(s[..., 3], axis=1)

    n_all = float(B * C * T)
    n_high = float(B * (C - C // 2) * T)
    denom = float(max(T - 1, 1))                  # T==1: torch would give NaN; we return 0
    var_row = jnp.maximum((row_sumsq - row_sum * row_sum / float(T)) / denom, 0.0)

    out = {
        "mean": jnp.sum(row_sum) / n_all,
        "high_mean": jnp.sum(row_sum[:, C // 2:]) / n_high,
        "max": jnp.max(row_max),
        "min": jnp.min(row_min),
        "var_mean": jnp.mean(var_row),
        "std_mean": jnp.mean(jnp.sqrt(var_row)),
    }
    if need_diff:
        out["diff_mean"] = jnp.sum(s[..., 4]) / float(B * C * max(T - 1, 1))
    return out


def quality_metrics(s, q10):
    clarity = jnp.clip(s["high_mean"] / (s["mean"] + 1e-8), 0.0, 1.0)
    noise = jnp.clip(q10 / (s["max"] + 1e-8), 0.0, 1.0)
    stability = jnp.clip(1.0 / (1.0 + s["var_mean"]), 0.0, 1.0)
    dyn = jnp.clip(20.0 * jnp.log10(s["max"] / (s["min"] + 1e-8)) / 60.0, 0.0, 1.0)
    overall = (clarity + (1.0 - noise) + stability + dyn) / 4.0
    return {
        "spectral_clarity": clarity,
        "noise_level": noise,
        "spectral_stability": stability,
        "dynamic_range": dyn,
        "overall_quality": overall,
    }


def artifact_score(s):
    click = 1.0 - jnp.clip(s["diff_mean"] * 10.0, 0.0, 1.0)
    stab = 1.0 - jnp.clip(s["std_mean"] * 2.0, 0.0, 1.0)
    rng = jnp.clip((s["max"] - s["min"]) / 10.0, 0.0, 1.0)
    return (click + stab + rng) / 3.0


def audio_quality_enhancer_forward(mel, params, apply_enhancement=True):
    B, C, T = mel.shape
    assert C % 4 == 0, "n_mel_channels must be divisible by 4 (band split)"
    C_pad = _round_up(C, 8)
    T_pad = _round_up(T, 128)
    tT = _pick_time_tile(T_pad)

    mel_f32 = mel.astype(jnp.float32)
    mel_p = jnp.pad(mel_f32, ((0, 0), (0, C_pad - C), (0, T_pad - T)))

    # TODO(synk): global 0.1-quantile (exact, interpolated) stays outside Pallas.
    q10_orig = jnp.quantile(mel_f32.reshape(-1), 0.1)

    if not apply_enhancement:
        slab_o = compute_stats(mel_p, T, tT)
        orig_q = quality_metrics(_finalize_stats(slab_o, B, C, T, need_diff=False), q10_orig)
        return mel_f32, orig_q

    w_eff, b_eff = pack_conv_params(params, C, C_pad)
    halo = build_halo(mel_p, tT)
    mel_out_p, slab_o, slab_f = enhance_and_stats(mel_p, halo, w_eff, b_eff, C, T, tT)
    mel_out = mel_out_p[:, :C, :T]

    q10_final = jnp.quantile(mel_out.reshape(-1), 0.1)
    orig_stats = _finalize_stats(slab_o, B, C, T, need_diff=False)
    final_stats = _finalize_stats(slab_f, B, C, T, need_diff=True)
    orig_q = quality_metrics(orig_stats, q10_orig)
    final_q = quality_metrics(final_stats, q10_final)
    art = artifact_score(final_stats)

    combined = {
        "original_quality": orig_q["overall_quality"],
        "final_quality": final_q["overall_quality"],
        "noise_reduction": orig_q["noise_level"] - final_q["noise_level"],
        "spectral_clarity": final_q["spectral_clarity"],
        "artifact_score": art,
        "enhancement_gain": final_q["overall_quality"] - orig_q["overall_quality"],
    }
    return mel_out, combined


# ----------------------------------------------------------------------------
# Deterministic parameter init (nn.Conv1d default uniform init, PyTorch weight layout).
# ----------------------------------------------------------------------------
def init_params(key, n_mel_channels):
    c4, c2 = n_mel_channels // 4, n_mel_channels // 2
    keys = jax.random.split(key, 6)

    def conv_init(kw, kb, cout, cin):
        bound = (cin * 3) ** -0.5
        w = jax.random.uniform(kw, (cout, cin, 3), jnp.float32, -bound, bound)
        b = jax.random.uniform(kb, (cout,), jnp.float32, -bound, bound)
        return w, b

    w_low, b_low = conv_init(keys[0], keys[1], c4, c4)
    w_mid, b_mid = conv_init(keys[2], keys[3], c2, c2)
    w_high, b_high = conv_init(keys[4], keys[5], c4, c4)
    return (w_low, b_low, w_mid, b_mid, w_high, b_high)


if __name__ == "__main__":
    key = jax.random.PRNGKey(0)
    k_mel, k_params = jax.random.split(key)

    B, C, T = 2, 16, 32                      # small [B, n_mel_channels, T]
    mel = jax.random.uniform(k_mel, (B, C, T), jnp.float32, minval=0.0, maxval=1.5)
    params = init_params(k_params, C)

    mel_out, metrics = audio_quality_enhancer_forward(mel, params, apply_enhancement=True)
    jax.block_until_ready(mel_out)
    jax.block_until_ready(metrics)
    assert mel_out.shape == (B, C, T)

    mel_same, orig_q = audio_quality_enhancer_forward(mel, params, apply_enhancement=False)
    jax.block_until_ready(orig_q)

    print("KERNEL_OK")
</pallas_src>

<mosaic_0001>
module attributes {stable_mosaic.version = 11 : i64} {
  func.func @kernel(%arg0: i32, %arg1: i32, %arg2: memref<1x16x128xf32, #tpu.memory_space<vmem>>, %arg3: memref<1x1x16x4xf32, #tpu.memory_space<vmem>>, %arg4: memref<48x16xbf16, #tpu.memory_space<vmem>>, %arg5: memref<16x1xf32, #tpu.memory_space<vmem>>, %arg6: memref<1x16x128xf32, #tpu.memory_space<vmem>>, %arg7: memref<1x1x16x8xf32, #tpu.memory_space<vmem>>, %arg8: memref<1x1x16x8xf32, #tpu.memory_space<vmem>>) attributes {dimension_semantics = [#tpu.dimension_semantics<parallel>, #tpu.dimension_semantics<parallel>], iteration_bounds = array<i64: 2, 1>, scalar_prefetch = 0 : i64, scratch_operands = 0 : i64, tpu.core_type = #tpu.core_type<tc>, window_params = [{transform_indices = @transform_0, window_bounds = array<i64: 1, 16, 128>}, {transform_indices = @transform_1, window_bounds = array<i64: 1, 1, 16, 4>}, {pipeline_mode = #tpu.pipeline_mode<synchronous>, transform_indices = @transform_2, window_bounds = array<i64: 48, 16>}, {pipeline_mode = #tpu.pipeline_mode<synchronous>, transform_indices = @transform_3, window_bounds = array<i64: 16, 1>}, {transform_indices = @transform_4, window_bounds = array<i64: 1, 16, 128>}, {transform_indices = @transform_5, window_bounds = array<i64: 1, 1, 16, 8>}, {transform_indices = @transform_6, window_bounds = array<i64: 1, 1, 16, 8>}]} {
    %c0 = arith.constant 0 : index
    %c0_0 = arith.constant 0 : index
    %c0_1 = arith.constant 0 : index
    %0 = vector.load %arg2[%c0, %c0_0, %c0_1] : memref<1x16x128xf32, #tpu.memory_space<vmem>>, vector<1x16x128xf32>
    %1 = vector.shape_cast %0 : vector<1x16x128xf32> to vector<16x128xf32>
    %c128_i32 = arith.constant 128 : i32
    %2 = arith.muli %arg1, %c128_i32 : i32
    %c32_i32 = arith.constant 32 : i32
    %3 = arith.subi %c32_i32, %2 : i32
    %c128_i32_2 = arith.constant 128 : i32
    %4 = arith.minsi %3, %c128_i32_2 : i32
    %5 = tpu.iota {dimensions = array<i32: 1>} : vector<16x128xi32>
    %6 = vector.broadcast %4 : i32 to vector<16x128xi32>
    %7 = arith.cmpi slt, %5, %6 : vector<16x128xi32>
    %cst = arith.constant dense<0.000000e+00> : vector<16xf32>
    %8 = vector.multi_reduction <add>, %1, %cst [1] : vector<16x128xf32> to vector<16xf32>
    %9 = vector.shape_cast %8 : vector<16xf32> to vector<16x1xf32>
    %10 = arith.mulf %1, %1 : vector<16x128xf32>
    %cst_3 = arith.constant dense<0.000000e+00> : vector<16xf32>
    %11 = vector.multi_reduction <add>, %10, %cst_3 [1] : vector<16x128xf32> to vector<16xf32>
    %12 = vector.shape_cast %11 : vector<16xf32> to vector<16x1xf32>
    %cst_4 = arith.constant -3.000000e+38 : f32
    %13 = vector.broadcast %cst_4 : f32 to vector<16x128xf32>
    %14 = arith.select %7, %1, %13 : vector<16x128xi1>, vector<16x128xf32>
    %cst_5 = arith.constant dense<0xFF800000> : vector<16xf32>
    %15 = vector.multi_reduction <maximumf>, %14, %cst_5 [1] : vector<16x128xf32> to vector<16xf32>
    %16 = vector.shape_cast %15 : vector<16xf32> to vector<16x1xf32>
    %cst_6 = arith.constant 3.000000e+38 : f32
    %17 = vector.broadcast %cst_6 : f32 to vector<16x128xf32>
    %18 = arith.select %7, %1, %17 : vector<16x128xi1>, vector<16x128xf32>
    %cst_7 = arith.constant dense<0x7F800000> : vector<16xf32>
    %19 = vector.multi_reduction <minimumf>, %18, %cst_7 [1] : vector<16x128xf32> to vector<16xf32>
    %20 = vector.shape_cast %19 : vector<16xf32> to vector<16x1xf32>
    %cst_8 = arith.constant 0.000000e+00 : f32
    %21 = vector.broadcast %cst_8 : f32 to vector<16x1xf32>
    %22 = tpu.concatenate %9, %12, %16, %20, %21, %21, %21, %21 in 1 : vector<16x1xf32>, vector<16x1xf32>, vector<16x1xf32>, vector<16x1xf32>, vector<16x1xf32>, vector<16x1xf32>, vector<16x1xf32>, vector<16x1xf32> -> vector<16x8xf32>
    %c0_9 = arith.constant 0 : index
    %c0_10 = arith.constant 0 : index
    %c0_11 = arith.constant 0 : index
    %c0_12 = arith.constant 0 : index
    %23 = vector.load %arg7[%c0_9, %c0_10, %c0_11, %c0_12] : memref<1x1x16x8xf32, #tpu.memory_space<vmem>>, vector<1x1x16x8xf32>
    %24 = vector.shape_cast %23 : vector<1x1x16x8xf32> to vector<16x8xf32>
    %25 = vector.shape_cast %22 : vector<16x8xf32> to vector<1x1x16x8xf32>
    tpu.vector_store %arg7[%c0_9, %c0_10, %c0_11, %c0_12], %25 {strides = array<i32>} : memref<1x1x16x8xf32, #tpu.memory_space<vmem>>, vector<1x1x16x8xf32>,
    %cst_13 = arith.constant 1.000000e-03 : f32
    %26 = vector.broadcast %cst_13 : f32 to vector<16x128xf32>
    %27 = arith.cmpf ogt, %1, %26 : vector<16x128xf32>
    %cst_14 = arith.constant 0.899999976 : f32
    %28 = vector.broadcast %cst_14 : f32 to vector<16x128xf32>
    %29 = arith.mulf %1, %28 : vector<16x128xf32>
    %30 = arith.select %27, %1, %29 : vector<16x128xi1>, vector<16x128xf32>
    %c0_15 = arith.constant 0 : index
    %c0_16 = arith.constant 0 : index
    %c0_17 = arith.constant 0 : index
    %c0_18 = arith.constant 0 : index
    %31 = vector.load %arg3[%c0_15, %c0_16, %c0_17, %c0_18] : memref<1x1x16x4xf32, #tpu.memory_space<vmem>>, vector<1x1x16x4xf32>
    %32 = vector.shape_cast %31 : vector<1x1x16x4xf32> to vector<16x4xf32>
    %cst_19 = arith.constant 1.000000e-03 : f32
    %33 = vector.broadcast %cst_19 : f32 to vector<16x4xf32>
    %34 = arith.cmpf ogt, %32, %33 : vector<16x4xf32>
    %cst_20 = arith.constant 0.899999976 : f32
    %35 = vector.broadcast %cst_20 : f32 to vector<16x4xf32>
    %36 = arith.mulf %32, %35 : vector<16x4xf32>
    %37 = arith.select %34, %32, %36 : vector<16x4xi1>, vector<16x4xf32>
    %c0_21 = arith.constant 0 : index
    %c0_22 = arith.constant 0 : index
    %38 = vector.load %arg4[%c0_21, %c0_22] : memref<48x16xbf16, #tpu.memory_space<vmem>>, vector<48x16xbf16>
    %39 = arith.truncf %30 : vector<16x128xf32> to vector<16x128xbf16>
    %cst_23 = arith.constant dense<0.000000e+00> : vector<48x128xf32>
    %40 = tpu.matmul %38, %39, %cst_23 {dimension_numbers = #tpu.dot_dimension_numbers<[1], [0], [0], [1], [0, 0, 1, 1], [], []>} : vector<48x16xbf16>, vector<16x128xbf16>, vector<48x128xf32> -> vector<48x128xf32>
    %c0_24 = arith.constant 0 : index
    %c0_25 = arith.constant 0 : index
    %41 = vector.load %arg4[%c0_24, %c0_25] : memref<48x16xbf16, #tpu.memory_space<vmem>>, vector<48x16xbf16>
    %42 = arith.truncf %37 : vector<16x4xf32> to vector<16x4xbf16>
    %cst_26 = arith.constant dense<0.000000e+00> : vector<48x4xf32>
    %43 = tpu.matmul %41, %42, %cst_26 {dimension_numbers = #tpu.dot_dimension_numbers<[1], [0], [0], [1], [0, 0, 1, 1], [], []>} : vector<48x16xbf16>, vector<16x4xbf16>, vector<48x4xf32> -> vector<48x4xf32>
    %44 = vector.extract_strided_slice %40 {offsets = [0, 0], sizes = [16, 128], strides = [1, 1]} : vector<48x128xf32> to vector<16x128xf32>
    %45 = vector.extract_strided_slice %40 {offsets = [16, 0], sizes = [16, 128], strides = [1, 1]} : vector<48x128xf32> to vector<16x128xf32>
    %46 = vector.extract_strided_slice %40 {offsets = [32, 0], sizes = [16, 128], strides = [1, 1]} : vector<48x128xf32> to vector<16x128xf32>
    %47 = vector.extract_strided_slice %43 {offsets = [0, 0], sizes = [16, 1], strides = [1, 1]} : vector<48x4xf32> to vector<16x1xf32>
    %48 = vector.extract_strided_slice %43 {offsets = [16, 1], sizes = [16, 1], strides = [1, 1]} : vector<48x4xf32> to vector<16x1xf32>
    %49 = vector.extract_strided_slice %43 {offsets = [32, 1], sizes = [16, 1], strides = [1, 1]} : vector<48x4xf32> to vector<16x1xf32>
    %50 = vector.extract_strided_slice %43 {offsets = [32, 2], sizes = [16, 1], strides = [1, 1]} : vector<48x4xf32> to vector<16x1xf32>
    %c0_i32 = arith.constant 0 : i32
    %51 = vector.broadcast %c0_i32 : i32 to vector<16x128xi32>
    %52 = arith.cmpi eq, %5, %51 : vector<16x128xi32>
    %c1_i32 = arith.constant 1 : i32
    %53 = tpu.dynamic_rotate %44 by %c1_i32 dim 1 : vector<16x128xf32>, i32 -> vector<16x128xf32>
    %54 = vector.shape_cast %47 : vector<16x1xf32> to vector<16x1xf32>
    %55 = vector.broadcast %54 : vector<16x1xf32> to vector<16x128xf32>
    %56 = arith.select %52, %55, %53 : vector<16x128xi1>, vector<16x128xf32>
    %c127_i32 = arith.constant 127 : i32
    %57 = vector.broadcast %c127_i32 : i32 to vector<16x128xi32>
    %58 = arith.cmpi eq, %5, %57 : vector<16x128xi32>
    %c127_i32_27 = arith.constant 127 : i32
    %59 = tpu.dynamic_rotate %46 by %c127_i32_27 dim 1 : vector<16x128xf32>, i32 -> vector<16x128xf32>
    %60 = vector.shape_cast %49 : vector<16x1xf32> to vector<16x1xf32>
    %61 = vector.broadcast %60 : vector<16x1xf32> to vector<16x128xf32>
    %62 = arith.select %58, %61, %59 : vector<16x128xi1>, vector<16x128xf32>
    %63 = arith.addf %45, %56 : vector<16x128xf32>
    %64 = arith.addf %63, %62 : vector<16x128xf32>
    %c0_28 = arith.constant 0 : index
    %c0_29 = arith.constant 0 : index
    %65 = vector.load %arg5[%c0_28, %c0_29] : memref<16x1xf32, #tpu.memory_space<vmem>>, vector<16x1xf32>
    %66 = vector.broadcast %65 : vector<16x1xf32> to vector<16x128xf32>
    %67 = arith.addf %64, %66 : vector<16x128xf32>
    %cst_30 = arith.constant 0.699999988 : f32
    %68 = vector.broadcast %cst_30 : f32 to vector<16x128xf32>
    %69 = arith.mulf %68, %30 : vector<16x128xf32>
    %70 = arith.addf %67, %69 : vector<16x128xf32>
    %cst_31 = arith.constant 0.699999988 : f32
    %71 = vector.broadcast %cst_31 : f32 to vector<16x128xf32>
    %72 = arith.cmpf ogt, %70, %71 : vector<16x128xf32>
    %cst_32 = arith.constant 0.699999988 : f32
    %73 = vector.broadcast %cst_32 : f32 to vector<16x128xf32>
    %74 = arith.subf %70, %73 : vector<16x128xf32>
    %cst_33 = arith.constant 3.000000e-01 : f32
    %75 = vector.broadcast %cst_33 : f32 to vector<16x128xf32>
    %76 = arith.mulf %74, %75 : vector<16x128xf32>
    %cst_34 = arith.constant 0.699999988 : f32
    %77 = vector.broadcast %cst_34 : f32 to vector<16x128xf32>
    %78 = arith.addf %77, %76 : vector<16x128xf32>
    %79 = arith.select %72, %78, %70 : vector<16x128xi1>, vector<16x128xf32>
    %c0_35 = arith.constant 0 : index
    %c0_36 = arith.constant 0 : index
    %c0_37 = arith.constant 0 : index
    %80 = vector.load %arg6[%c0_35, %c0_36, %c0_37] : memref<1x16x128xf32, #tpu.memory_space<vmem>>, vector<1x16x128xf32>
    %81 = vector.shape_cast %80 : vector<1x16x128xf32> to vector<16x128xf32>
    %82 = vector.shape_cast %79 : vector<16x128xf32> to vector<1x16x128xf32>
    tpu.vector_store %arg6[%c0_35, %c0_36, %c0_37], %82 {strides = array<i32>} : memref<1x16x128xf32, #tpu.memory_space<vmem>>, vector<1x16x128xf32>,
    %83 = vector.extract_strided_slice %44 {offsets = [0, 127], sizes = [16, 1], strides = [1, 1]} : vector<16x128xf32> to vector<16x1xf32>
    %84 = arith.addf %83, %48 : vector<16x1xf32>
    %85 = arith.addf %84, %50 : vector<16x1xf32>
    %c0_38 = arith.constant 0 : index
    %c0_39 = arith.constant 0 : index
    %86 = vector.load %arg5[%c0_38, %c0_39] : memref<16x1xf32, #tpu.memory_space<vmem>>, vector<16x1xf32>
    %87 = arith.addf %85, %86 : vector<16x1xf32>
    %88 = vector.extract_strided_slice %37 {offsets = [0, 1], sizes = [16, 1], strides = [1, 1]} : vector<16x4xf32> to vector<16x1xf32>
    %cst_40 = arith.constant 0.699999988 : f32
    %89 = vector.broadcast %cst_40 : f32 to vector<16x1xf32>
    %90 = arith.mulf %89, %88 : vector<16x1xf32>
    %91 = arith.addf %87, %90 : vector<16x1xf32>
    %cst_41 = arith.constant 0.699999988 : f32
    %92 = vector.broadcast %cst_41 : f32 to vector<16x1xf32>
    %93 = arith.cmpf ogt, %91, %92 : vector<16x1xf32>
    %cst_42 = arith.constant 0.699999988 : f32
    %94 = vector.broadcast %cst_42 : f32 to vector<16x1xf32>
    %95 = arith.subf %91, %94 : vector<16x1xf32>
    %cst_43 = arith.constant 3.000000e-01 : f32
    %96 = vector.broadcast %cst_43 : f32 to vector<16x1xf32>
    %97 = arith.mulf %95, %96 : vector<16x1xf32>
    %cst_44 = arith.constant 0.699999988 : f32
    %98 = vector.broadcast %cst_44 : f32 to vector<16x1xf32>
    %99 = arith.addf %98, %97 : vector<16x1xf32>
    %100 = arith.select %93, %99, %91 : vector<16x1xi1>, vector<16x1xf32>
    %c1_i32_45 = arith.constant 1 : i32
    %101 = arith.addi %arg1, %c1_i32_45 : i32
    %c128_i32_46 = arith.constant 128 : i32
    %102 = arith.muli %101, %c128_i32_46 : i32
    %c32_i32_47 = arith.constant 32 : i32
    %103 = arith.cmpi slt, %102, %c32_i32_47 : i32
    %c1_i32_48 = arith.constant 1 : i32
    %104 = arith.subi %4, %c1_i32_48 : i32
    %105 = arith.extui %103 : i1 to i32
    %106 = arith.addi %104, %105 : i32
    %c127_i32_49 = arith.constant 127 : i32
    %107 = vector.broadcast %c127_i32_49 : i32 to vector<16x128xi32>
    %108 = arith.cmpi eq, %5, %107 : vector<16x128xi32>
    %c127_i32_50 = arith.constant 127 : i32
    %109 = tpu.dynamic_rotate %79 by %c127_i32_50 dim 1 : vector<16x128xf32>, i32 -> vector<16x128xf32>
    %110 = vector.shape_cast %100 : vector<16x1xf32> to vector<16x1xf32>
    %111 = vector.broadcast %110 : vector<16x1xf32> to vector<16x128xf32>
    %112 = arith.select %108, %111, %109 : vector<16x128xi1>, vector<16x128xf32>
    %113 = vector.broadcast %106 : i32 to vector<16x128xi32>
    %114 = arith.cmpi slt, %5, %113 : vector<16x128xi32>
    %115 = arith.subf %79, %112 : vector<16x128xf32>
    %116 = math.absf %115 : vector<16x128xf32>
    %cst_51 = arith.constant 0.000000e+00 : f32
    %117 = vector.broadcast %cst_51 : f32 to vector<16x128xf32>
    %118 = arith.select %114, %116, %117 : vector<16x128xi1>, vector<16x128xf32>
    %cst_52 = arith.constant dense<0.000000e+00> : vector<16xf32>
    %119 = vector.multi_reduction <add>, %118, %cst_52 [1] : vector<16x128xf32> to vector<16xf32>
    %120 = vector.shape_cast %119 : vector<16xf32> to vector<16x1xf32>
    %cst_53 = arith.constant 0.000000e+00 : f32
    %121 = vector.broadcast %cst_53 : f32 to vector<16x128xf32>
    %122 = arith.select %7, %79, %121 : vector<16x128xi1>, vector<16x128xf32>
    %cst_54 = arith.constant dense<0.000000e+00> : vector<16xf32>
    %123 = vector.multi_reduction <add>, %122, %cst_54 [1] : vector<16x128xf32> to vector<16xf32>
    %124 = vector.shape_cast %123 : vector<16xf32> to vector<16x1xf32>
    %125 = arith.mulf %122, %122 : vector<16x128xf32>
    %cst_55 = arith.constant dense<0.000000e+00> : vector<16xf32>
    %126 = vector.multi_reduction <add>, %125, %cst_55 [1] : vector<16x128xf32> to vector<16xf32>
    %127 = vector.shape_cast %126 : vector<16xf32> to vector<16x1xf32>
    %cst_56 = arith.constant -3.000000e+38 : f32
    %128 = vector.broadcast %cst_56 : f32 to vector<16x128xf32>
    %129 = arith.select %7, %79, %128 : vector<16x128xi1>, vector<16x128xf32>
    %cst_57 = arith.constant dense<0xFF800000> : vector<16xf32>
    %130 = vector.multi_reduction <maximumf>, %129, %cst_57 [1] : vector<16x128xf32> to vector<16xf32>
    %131 = vector.shape_cast %130 : vector<16xf32> to vector<16x1xf32>
    %cst_58 = arith.constant 3.000000e+38 : f32
    %132 = vector.broadcast %cst_58 : f32 to vector<16x128xf32>
    %133 = arith.select %7, %79, %132 : vector<16x128xi1>, vector<16x128xf32>
    %cst_59 = arith.constant dense<0x7F800000> : vector<16xf32>
    %134 = vector.multi_reduction <minimumf>, %133, %cst_59 [1] : vector<16x128xf32> to vector<16xf32>
    %135 = vector.shape_cast %134 : vector<16xf32> to vector<16x1xf32>
    %cst_60 = arith.constant 0.000000e+00 : f32
    %136 = vector.broadcast %cst_60 : f32 to vector<16x1xf32>
    %137 = tpu.concatenate %124, %127, %131, %135, %120, %136, %136, %136 in 1 : vector<16x1xf32>, vector<16x1xf32>, vector<16x1xf32>, vector<16x1xf32>, vector<16x1xf32>, vector<16x1xf32>, vector<16x1xf32>, vector<16x1xf32> -> vector<16x8xf32>
    %c0_61 = arith.constant 0 : index
    %c0_62 = arith.constant 0 : index
    %c0_63 = arith.constant 0 : index
    %c0_64 = arith.constant 0 : index
    %138 = vector.load %arg8[%c0_61, %c0_62, %c0_63, %c0_64] : memref<1x1x16x8xf32, #tpu.memory_space<vmem>>, vector<1x1x16x8xf32>
    %139 = vector.shape_cast %138 : vector<1x1x16x8xf32> to vector<16x8xf32>
    %140 = vector.shape_cast %137 : vector<16x8xf32> to vector<1x1x16x8xf32>
    tpu.vector_store %arg8[%c0_61, %c0_62, %c0_63, %c0_64], %140 {strides = array<i32>} : memref<1x1x16x8xf32, #tpu.memory_space<vmem>>, vector<1x1x16x8xf32>,
    return
  }
  func.func @transform_0(%arg0: i32, %arg1: i32) -> (i32, i32, i32) {
    %c0_i32 = arith.constant 0 : i32
    %c0_i32_0 = arith.constant 0 : i32
    return %arg0, %c0_i32, %arg1 : i32, i32, i32
  }
  func.func @transform_1(%arg0: i32, %arg1: i32) -> (i32, i32, i32, i32) {
    %c0_i32 = arith.constant 0 : i32
    %c0_i32_0 = arith.constant 0 : i32
    %c0_i32_1 = arith.constant 0 : i32
    return %arg0, %arg1, %c0_i32, %c0_i32_0 : i32, i32, i32, i32
  }
  func.func @transform_2(%arg0: i32, %arg1: i32) -> (i32, i32) {
    %c0_i32 = arith.constant 0 : i32
    %c0_i32_0 = arith.constant 0 : i32
    %c0_i32_1 = arith.constant 0 : i32
    return %c0_i32, %c0_i32_0 : i32, i32
  }
  func.func @transform_3(%arg0: i32, %arg1: i32) -> (i32, i32) {
    %c0_i32 = arith.constant 0 : i32
    %c0_i32_0 = arith.constant 0 : i32
    %c0_i32_1 = arith.constant 0 : i32
    return %c0_i32, %c0_i32_0 : i32, i32
  }
  func.func @transform_4(%arg0: i32, %arg1: i32) -> (i32, i32, i32) {
    %c0_i32 = arith.constant 0 : i32
    %c0_i32_0 = arith.constant 0 : i32
    return %arg0, %c0_i32, %arg1 : i32, i32, i32
  }
  func.func @transform_5(%arg0: i32, %arg1: i32) -> (i32, i32, i32, i32) {
    %c0_i32 = arith.constant 0 : i32
    %c0_i32_0 = arith.constant 0 : i32
    %c0_i32_1 = arith.constant 0 : i32
    return %arg0, %arg1, %c0_i32, %c0_i32_0 : i32, i32, i32, i32
  }
  func.func @transform_6(%arg0: i32, %arg1: i32) -> (i32, i32, i32, i32) {
    %c0_i32 = arith.constant 0 : i32
    %c0_i32_0 = arith.constant 0 : i32
    %c0_i32_1 = arith.constant 0 : i32
    return %arg0, %arg1, %c0_i32, %c0_i32_0 : i32, i32, i32, i32
  }
}

</mosaic_0001>

<bundles_post_ra>
// kernel: tpu_custom_call.1
= control target key start
LH: loop header
LB: loop body
LE: loop exit
PB: predicated region body
PF: predicated region fallthrough
CT: control target
= control target key end

     0   :  { %12 = vsyncpa [#allocation3], 0  ;;  %s1526_s0 = inlined_call_operand.vmem [shape: f32[2,16,128], index: 0, kind: input, shape index: {}]   ;;  %s1527_s1 = inlined_call_operand.vmem [shape: f32[2,1,16,4], index: 1, kind: input, shape index: {}]   ;;  %s1528_s2 = inlined_call_operand.vmem [shape: bf16[48,16], index: 2, kind: input, shape index: {}]   ;;  %s1529_s3 = inlined_call_operand.vmem [shape: f32[16,1], index: 3, kind: input, shape index: {}]   ;;  %s1530_s4 = inlined_call_operand.hbm [shape: f32[2,16,128], index: 4, kind: output, shape index: {0}]   ;;  %s1531_s5 = inlined_call_operand.vmem [shape: f32[2,1,16,8], index: 5, kind: output, shape index: {1}]   ;;  %s1532_s6 = inlined_call_operand.vmem [shape: f32[2,1,16,8], index: 6, kind: output, shape index: {2}]  }
   0x1   :  { %14 = vsyncpa [#allocation3 + $0x1], 0  ;;  %s1259_s21 = smov 0   ;;  %s1261_s22 = smov 0  }
   0x2   :  { %s1263_s23 = smov 0   ;;  %s1265_s24 = smov 0  }
   0x3   :  { %s1267_s25 = smov 0   ;;  %s1269_s26 = smov 0  }
   0x4 LB: > { %s986_s27 = sadd.s32 4294967295, %s1210_s26   ;;  %s987_s28 = sadd.s32 4294967294, %s1210_s26   ;;  %s1210_s26 = sphi %s1269_s26, %s20_s26   ;;  %s1206_s25 = sphi %s1267_s25, %s1539_s25   ;;  %s1202_s24 = sphi %s1265_s24, %s1538_s24   ;;  %s1198_s23 = sphi %s1263_s23, %s1537_s23   ;;  %s1194_s22 = sphi %s1261_s22, %s1536_s22   ;;  %s1190_s21 = sphi %s1259_s21, %s1535_s21  }
   0x5   : > { %s32_s29 = sadd.s32 1, %s1206_s25  ;;  %s139_s30 = sadd.s32 1, %s1198_s23 }
   0x6   : > { %p34_p0 = scmp.ge.s32.totalorder %s32_s29, 2  ;;  %p149_p1 = scmp.ne.s32.totalorder %s1198_s23, %s1194_s22 }
   0x7   : > { %p150_p2 = scmp.eq.s32.totalorder %s986_s27, 1  ;;  %p155_p3 = scmp.ne.s32.totalorder %s1194_s22, %s1190_s21 }
   0x8   : > { %s1541_s29 = smov (%p34_p0, %s32_s29), 0  ;;  %p156_p5 = scmp.eq.s32.totalorder %s987_s28, 1 }
   0x9   : > { %p1299_p4 = por %p150_p2, %p149_p1  ;;  %s134_s8 = ssub.s32 %s1206_s25, %s1541_s29 }
   0xa   : > { %p990_p6 = scmp.ge.s32.totalorder %s1210_s26, 1  ;;  %p137_p7 = scmp.eq.s32.totalorder %s134_s8, 0 }
   0xb   : > { %p1306_p8 = por %p156_p5, %p155_p3  ;;  %p259_p9 = scmp.lt.s32.totalorder %s1210_s26, 3 }
   0xc   : > { %s1312_s10 = scalar_select %p137_p7, %s1198_s23, %s139_s30  }
   0xd   : > { %p260_p10 = pnand %p990_p6, %p259_p9 }
   0xe   : > { %p319_p11 = scmp.lt.s32.totalorder (!%p260_p10), %s1202_s24, 1  ;;  %s1215_s30 = smov (!%p260_p10), 127  }
   0xf   : > { %263 = sbr.rel (%p260_p10) target bundleno = 666 (0x29a), region = 36  ;;  %s1217_s17 = smov (!%p260_p10), 1  }
  0x10   : > { %s1218_s18 = smov (!%p260_p10), 126   ;;  %s294_s20 = sand.u32 (!%p260_p10), 1, %s1194_s22  }
  0x11   : > { %s991_s27 = sshll.u32 (!%p260_p10), %s294_s20, 4  ;;  %s1441_s14 = scalar_lea.sflag (!%p260_p10), [#allocation3], %s294_s20 }
  0x14   : > { %v1212_v0 = vmov 0.0   ;;  %s320_s11 = scalar_select %p319_p11, %s1202_s24, 1  ;;  %vm1213_vm0 = vmmov 0   ;;  %v610_v1 = vld [vmem:[%s1529_s3] sm:$0xff]  ;;  %v611_v2 = vld [vmem:[%s1529_s3 + $0x8] sm:$0xff]  ;;  %v1214_v3 = vmov 0   ;;  %v361_v56 = vlaneseq }
  0x15   : > { %1031 = vmatprep.subr.bf16.mxu0 %v1212_v0  ;;  %1045 = vmatprep.subr.bf16.mxu1 %v1212_v0  ;;  %v1131_v18 = vld [vmem:[%s1528_s2] sm:$0xff]   ;;  %vm447_vm5 = vcmask 130048   ;;  %v1132_v19 = vld [vmem:[%s1528_s2 + $0x8] sm:$0xff]   ;;  %v1133_v20 = vld [vmem:[%s1528_s2 + $0x10] sm:$0xff]   ;;  %v1216_v21 = vmov 1   ;;  %v1220_v48 = vmov 127  }
  0x16   : > { %1033 = vmatprep.mubr.msk.bf16.mxu0 %vm1213_vm0, %v1212_v0  ;;  %1047 = vmatprep.mubr.msk.bf16.mxu1 %vm1213_vm0, %v1212_v0  ;;  %s1324_s16 = sshll.u32 %s320_s11, 4  ;;  %v1373_v58 = vand.u32 127, %v361_v56 }
  0x17   : > { %1125 = vset.pattern.permute.xlu1 %v1214_v3  ;;  %1126 = vset.pattern.permute.xlu0 %v1214_v3  ;;  %s326_s19 = scalar_lea.vmem %s1526_s0, %s1324_s16  ;;  %s335_s28 = scalar_lea.vmem %s1527_s1, %s1324_s16 }
  0x18   : > { %614 = vperm.xlu1 %1125, %v610_v1   ;;  %619 = vperm.xlu0 %1126, %v611_v2   ;;  %v1334_v4 = vld [vmem:[%s326_s19] sm:$0xff]  ;;  %v1336_v5 = vld [vmem:[%s326_s19 + $0x8] sm:$0xff]  ;;  %s1219_s19 = smov 125   ;;  %vm572_vm6 = vcmp.eq.s32.totalorder %v1373_v58, 0  ;;  %vm589_vm7 = vcmp.eq.s32.totalorder %v1373_v58, 127  ;;  %vm364_vm12 = vcmp.lt.s32.totalorder %v1373_v58, 32 }
  0x19   : > { %v417_v6 = vld [vmem:[%s335_s28] sm:$0xff]  ;;  %vm411_vm1 = vcmp.gt.f32.partialorder %v1334_v4, 0.001  ;;  %vm412_vm2 = vcmp.gt.f32.partialorder %v1336_v5, 0.001  ;;  %v418_v9 = vld [vmem:[%s335_s28 + $0x8] sm:$0xff] }
  0x1a   : > { %v413_v7 = vmul.f32 0.9, %v1334_v4  ;;  %v414_v8 = vmul.f32 0.9, %v1336_v5  ;;  %vm419_vm3 = vcmp.gt.f32.partialorder %v417_v6, 0.001 }
  0x1b   : > { %vm420_vm4 = vcmp.gt.f32.partialorder %v418_v9, 0.001  ;;  %v421_v11 = vmul.f32 0.9, %v417_v6  ;;  %v422_v12 = vmul.f32 0.9, %v418_v9 }
  0x1c   : > { %v1343_v10 = vsel %vm411_vm1, %v1334_v4, %v413_v7  ;;  %662 = vrot.lane.b32.xlu1 %v610_v1, %s1215_s30  ;;  %v1347_v13 = vsel %vm412_vm2, %v1336_v5, %v414_v8  ;;  %s1388_s28 = scalar_lea.vmem [#allocation2], %s991_s27  ;;  %vm715_vm13 = vcmp.lt.s32.totalorder %v1373_v58, 31 }
  0x1d   : > { %v431_v14 = vpack.c.bf16 %v1347_v13, %v1343_v10  ;;  %v423_v15 = vsel %vm419_vm3, %v417_v6, %v421_v11  ;;  %v424_v16 = vsel %vm420_vm4, %v418_v9, %v422_v12  ;;  %1128 = vset.pattern.permute.xlu1 %v1216_v21  ;;  %v624_v8 = vmul.f32 0.7, %v1343_v10  ;;  %s799_s8 = sshll.u32 %s1388_s28, 4  ;;  %s1437_s8 = int_to_ptr.vmem [resolvable:$true] %s799_s8 }
  0x1e   : > { %v514_v17 = vpack.c.bf16 %v424_v16, %v423_v15  ;;  %v670_v46 = vmul.f32 0.7, %v423_v15  ;;  %v671_v47 = vmul.f32 0.7, %v424_v16  ;;  %s1134_s15 = scalar_lea.vmem %s1437_s8, 256 }
  0x1f   : > { %1032 = vmatpush3.bf16.msra.mxu0 %v431_v14  ;;  %p1135_p12 = scmp.ne.s32.totalorder %s1437_s8, %s1134_s15 }
  0x20   : > { %664 = vrot.lane.b32.xlu1 %v611_v2, %s1215_s30  ;;  %1046 = vmatpush3.bf16.msra.mxu1 %v514_v17 }
  0x21   : > { %p1136_p13 = pnand %p1135_p12, %p1299_p4 }
  0x22   : > { %1034 = vmatmul.mubr.msk.bf16.vlgmr.msra.gmra.mxu0 %vm447_vm5, %v1131_v18 }
  0x23   : > { %1048 = vmatmul.mubr.msk.bf16.vlgmr.msra.gmra.mxu1 %vm447_vm5, %v1131_v18  ;;  %1037 = vmatprep.mubr.msk.bf16.mxu0 %vm1213_vm0, %v1212_v0  ;;  %p1137_p0 = pneg %p1136_p13 }
  0x24   : > { %1051 = vmatprep.mubr.msk.bf16.mxu1 %vm1213_vm0, %v1212_v0 }
  0x2a   : > { %1038 = vmatmul.mubr.msk.bf16.gmra.mxu0 %vm447_vm5, %v1132_v19 }
  0x2b   : > { %1052 = vmatmul.mubr.msk.bf16.gmra.mxu1 %vm447_vm5, %v1132_v19  ;;  %1041 = vmatprep.mubr.msk.bf16.mxu0 %vm1213_vm0, %v1212_v0 }
  0x2c   : > { %1055 = vmatprep.mubr.msk.bf16.mxu1 %vm1213_vm0, %v1212_v0 }
  0x32   : > { %1042 = vmatmul.mubr.msk.bf16.gmra.mxu0 %vm447_vm5, %v1133_v20 }
  0x33   : > { %1056 = vmatmul.mubr.msk.bf16.gmra.mxu1 %vm447_vm5, %v1133_v20  ;;  %v625_v20 = vmul.f32 0.7, %v1347_v13 }
  0x93   : > { %v615_v49 = vpop.permute.xlu1 %614  ;;  %v620_v52 = vpop.permute.xlu0 %619 }
  0x97   : > { %v663_v50 = vpop.permute.xlu1 %662 }
  0x9b   : > { %v665_v51 = vpop.permute.xlu1 %664 }
  0xe2   : > { %v1365_v22 = vpop.f32.mrf.mxu0 }
  0xe3   : > { %v549_v23 = vpop.f32.mrf.mxu1  ;;  %573 = vrot.lane.b32.xlu1 %v1365_v22, %s1217_s17 }
  0xe4   : > { %579 = vperm.xlu0 %1126, %v549_v23   ;;  %v1035_v24 = vpop.f32.mrf.mxu0 }
  0xe5   : > { %v1049_v25 = vpop.f32.mrf.mxu1 }
  0xe6   : > { %v1368_v26 = vpop.f32.mrf.mxu0 }
  0xe7   : > { %v552_v27 = vpop.f32.mrf.mxu1 }
  0xe8   : > { %584 = vperm.xlu0 %1126, %v552_v27   ;;  %v1036_v28 = vpop.f32.mrf.mxu0 }
  0xe9   : > { %v1050_v29 = vpop.f32.mrf.mxu1 }
  0xea   : > { %v499_v30 = vpop.f32.mrf.mxu0 }
  0xeb   : > { %v557_v31 = vpop.f32.mrf.mxu1 }
  0xec   : > { %642 = vrot.lane.b32.xlu1 %v557_v31, %s1218_s18  ;;  %575 = vrot.lane.b32.xlu0 %v1368_v26, %s1217_s17  ;;  %v1039_v32 = vpop.f32.mrf.mxu0 }
  0xed   : > { %v1053_v33 = vpop.f32.mrf.mxu1  ;;  %1127 = vset.pattern.permute.xlu0 %v1216_v21 }
  0xee   : > { %v502_v34 = vpop.f32.mrf.mxu0 }
  0xef   : > { %v560_v35 = vpop.f32.mrf.mxu1 }
  0xf0   : > { %644 = vrot.lane.b32.xlu1 %v560_v35, %s1218_s18  ;;  %v1040_v36 = vpop.f32.mrf.mxu0 }
  0xf1   : > { %v1054_v37 = vpop.f32.mrf.mxu1 }
  0xf2   : > { %v507_v38 = vpop.f32.mrf.mxu0 }
  0xf3   : > { %v565_v39 = vpop.f32.mrf.mxu1 }
  0xf4   : > { %650 = vrot.lane.b32.xlu1 %v565_v39, %s1219_s19  ;;  %596 = vperm.xlu0 %1127, %v565_v39   ;;  %v1043_v40 = vpop.f32.mrf.mxu0 }
  0xf5   : > { %v1057_v41 = vpop.f32.mrf.mxu1 }
  0xf6   : > { %v510_v42 = vpop.f32.mrf.mxu0 }
  0xf7   : > { %v568_v43 = vpop.f32.mrf.mxu1 }
  0xf8   : > { %601 = vperm.xlu1 %1128, %v568_v43   ;;  %590 = vrot.lane.b32.xlu0 %v507_v38, %s1215_s30  ;;  %v1044_v44 = vpop.f32.mrf.mxu0 }
  0xf9   : > { %v1058_v45 = vpop.f32.mrf.mxu1  ;;  %1129 = vset.pattern.permute.xlu0 %v1220_v48 }
  0xfa   : > { %v369_v45 = vmul.f32 %v1334_v4, %v1334_v4 }
  0xfc   : > { %652 = vrot.lane.b32.xlu0 %v568_v43, %s1219_s19  ;;  %592 = vrot.lane.b32.xlu1 %v510_v42, %s1215_s30 }
  0xfd   : > { %1130 = vset.pattern.permute.xlu1 %v1220_v48 }
 0x100   : > { %674 = vrot.lane.b32.xlu0 %v670_v46, %s1218_s18  ;;  %676 = vrot.lane.b32.xlu1 %v671_v47, %s1218_s18  ;;  %v370_v46 = vmul.f32 %v1336_v5, %v1336_v5 }
 0x155   : > { %v574_v53 = vpop.permute.xlu1 %573 }
 0x15e   : > { %v643_v55 = vpop.permute.xlu1 %642 }
 0x15f   : > { %v580_v54 = vpop.permute.xlu0 %579  ;;  %v648_v3 = vadd.f32 %v643_v55, %v1365_v22 }
 0x160   : > { %v587_v63 = vsel %vm572_vm6, %v580_v54, %v574_v53  ;;  %v381_v54 = vsel %vm364_vm12, %v1334_v4, 3e+38 }
 0x161   : > { %v606_v0 = vadd.f32 %v587_v63, %v499_v30 }
 0x162   : > { %v645_v59 = vpop.permute.xlu1 %644 }
 0x163   : > { %v585_v57 = vpop.permute.xlu0 %584  ;;  %v649_v11 = vadd.f32 %v645_v59, %v1368_v26 }
 0x166   : > { %v651_v61 = vpop.permute.xlu1 %650 }
 0x167   : > { %v576_v60 = vpop.permute.xlu0 %575  ;;  %v656_v12 = vadd.f32 %v651_v61, %v648_v3 }
 0x168   : > { %v588_v6 = vsel %vm572_vm6, %v585_v57, %v576_v60 }
 0x169   : > { %v607_v14 = vadd.f32 %v588_v6, %v502_v34  ;;  %v668_v23 = vadd.f32 %v663_v50, %v656_v12  ;;  %v375_v50 = vsel %vm364_vm12, %v1334_v4, -3e+38 }
 0x16f   : > { %v597_v62 = vpop.permute.xlu0 %596 }
 0x173   : > { %v602_v1 = vpop.permute.xlu1 %601  ;;  %v591_v2 = vpop.permute.xlu0 %590 }
 0x174   : > { %v604_v7 = vsel %vm589_vm7, %v597_v62, %v591_v2 }
 0x175   : > { %v608_v9 = vadd.f32 %v606_v0, %v604_v7 }
 0x177   : > { %v622_v15 = vadd.f32 %v615_v49, %v608_v9  ;;  %v653_v16 = vpop.permute.xlu0 %652  ;;  %v593_v17 = vpop.permute.xlu1 %592  ;;  %v376_v49 = vsel %vm364_vm12, %v1336_v5, -3e+38 }
 0x178   : > { %v657_v18 = vadd.f32 %v653_v16, %v649_v11  ;;  %v605_v19 = vsel %vm589_vm7, %v602_v1, %v593_v17 }
 0x179   : > { %v626_v21 = vadd.f32 %v624_v8, %v622_v15  ;;  %v609_v22 = vadd.f32 %v607_v14, %v605_v19 }
 0x17a   : > { %v669_v10 = vadd.f32 %v665_v51, %v657_v18  ;;  %v382_v51 = vsel %vm364_vm12, %v1336_v5, 3e+38 }
 0x17b   : > { %v1009_v24 = vadd.f32 -0.7, %v626_v21  ;;  %v623_v25 = vadd.f32 %v620_v52, %v609_v22  ;;  %v675_v26 = vpop.permute.xlu0 %674  ;;  %v677_v27 = vpop.permute.xlu1 %676  ;;  %vm628_vm8 = vcmp.gt.f32.partialorder %v626_v21, 0.7 }
 0x17c   : > { %v680_v28 = vadd.f32 %v675_v26, %v668_v23  ;;  %v681_v29 = vadd.f32 %v677_v27, %v669_v10 }
 0x17d   : > { %v632_v30 = vmul.f32 0.3, %v1009_v24  ;;  %v627_v31 = vadd.f32 %v625_v20, %v623_v25 }
 0x17e   : > { %v1011_v32 = vadd.f32 -0.7, %v680_v28  ;;  %v1012_v33 = vadd.f32 -0.7, %v681_v29  ;;  %vm682_vm9 = vcmp.gt.f32.partialorder %v680_v28, 0.7 }
 0x17f   : > { %v634_v34 = vadd.f32 0.7, %v632_v30  ;;  %v1010_v35 = vadd.f32 -0.7, %v627_v31  ;;  %vm683_vm10 = vcmp.gt.f32.partialorder %v681_v29, 0.7 }
 0x180   : > { %v686_v13 = vmul.f32 0.3, %v1011_v32  ;;  %v687_v36 = vmul.f32 0.3, %v1012_v33  ;;  %vm629_vm11 = vcmp.gt.f32.partialorder %v627_v31, 0.7 }
 0x181   : > { %v633_v37 = vmul.f32 0.3, %v1010_v35  ;;  %v636_v38 = vsel %vm628_vm8, %v634_v34, %v626_v21 }
 0x182   : > { %v688_v39 = vadd.f32 0.7, %v686_v13  ;;  %v689_v40 = vadd.f32 0.7, %v687_v36  ;;  %638 = vst [vmem:[%s1388_s28] sm:$0xff] %v636_v38  ;;  %v726_v47 = vsel %vm364_vm12, %v636_v38, 0.0 }
 0x183   : > { %v635_v41 = vadd.f32 0.7, %v633_v37  ;;  %v732_v48 = vmul.f32 %v726_v47, %v726_v47  ;;  %v738_v52 = vsel %vm364_vm12, %v636_v38, -3e+38 }
 0x184   : > { %v690_v42 = vsel %vm682_vm9, %v688_v39, %v680_v28  ;;  %v691_v43 = vsel %vm683_vm10, %v689_v40, %v681_v29 }
 0x185   : > { %704 = vperm.xlu0 %1129, %v690_v42   ;;  %709 = vperm.xlu1 %1130, %v691_v43   ;;  %v637_v44 = vsel %vm629_vm11, %v635_v41, %v627_v31 }
 0x186   : > { %639 = vst [vmem:[%s1388_s28 + $0x8] sm:$0xff] %v637_v44  ;;  %v727_v53 = vsel %vm364_vm12, %v637_v44, 0.0  ;;  %v739_v55 = vsel %vm364_vm12, %v637_v44, -3e+38  ;;  %v745_v56 = vsel %vm364_vm12, %v637_v44, 3e+38 }
 0x187   : > { %v733_v57 = vmul.f32 %v727_v53, %v727_v53 }
 0x189   : > { %700 = vrot.lane.b32.xlu0 %v637_v44, %s1215_s30  ;;  %698 = vrot.lane.b32.xlu1 %v636_v38, %s1215_s30  ;;  %s1022_s30 = sshll.u32 %s1202_s24, 8  ;;  %s1221_s24 = smov [#allocation2]  }
 0x18a   : > { %s1435_s13 = scalar_lea.hbm %s1530_s4, %s1022_s30  ;;  %s1138_s17 = sshll.u32 %s1221_s24, 4  ;;  %s1139_s17 = int_to_ptr.vmem [resolvable:$false] %s1138_s17 }
 0x18b   : > { %s1140_s18 = scalar_lea.vmem %s1139_s17, 512  ;;  %p1141_p1 = scmp.lt.s32.totalorder %s1437_s8, %s1139_s17 }
 0x18c   : > { %p1142_p2 = scmp.lt.s32.totalorder %s1140_s18, %s1134_s15 }
 0x18e   : > { %p1143_p3 = por %p1142_p2, %p1141_p1 }
 0x190   : > { %p1144_p5 = pnand %p1143_p3, %p1137_p0 }
 0x1a8   : > { %367 = vadd.xlane.f32.xlu0 %v1336_v5  ;;  %v744_v5 = vsel %vm364_vm12, %v636_v38, 3e+38 }
 0x1ac   : > { %371 = vadd.xlane.f32.xlu0 %v369_v45 }
 0x1ad   : > { %365 = vadd.xlane.f32.xlu1 %v1334_v4 }
 0x1b0   : > { %728 = vadd.xlane.f32.xlu0 %v726_v47 }
 0x1b1   : > { %373 = vadd.xlane.f32.xlu1 %v370_v46 }
 0x1b4   : > { %734 = vadd.xlane.f32.xlu0 %v732_v48 }
 0x1b5   : > { %379 = vmax.xlane.f32.xlu1 %v376_v49 }
 0x1b8   : > { %377 = vmax.xlane.f32.xlu0 %v375_v50 }
 0x1b9   : > { %385 = vmin.xlane.f32.xlu1 %v382_v51 }
 0x1bc   : > { %740 = vmax.xlane.f32.xlu0 %v738_v52 }
 0x1bd   : > { %730 = vadd.xlane.f32.xlu1 %v727_v53 }
 0x1c0   : > { %383 = vmin.xlane.f32.xlu0 %v381_v54 }
 0x1c1   : > { %742 = vmax.xlane.f32.xlu1 %v739_v55 }
 0x1c4   : > { %746 = vmin.xlane.f32.xlu0 %v744_v5 }
 0x1c5   : > { %748 = vmin.xlane.f32.xlu1 %v745_v56 }
 0x1c9   : > { %736 = vadd.xlane.f32.xlu1 %v733_v57 }
 0x200   : > { %v705_v59 = vpop.permute.xlu0 %704  ;;  %v710_v60 = vpop.permute.xlu1 %709 }
 0x204   : > { %v701_v4 = vpop.permute.xlu0 %700  ;;  %v699_v61 = vpop.permute.xlu1 %698 }
 0x205   : > { %v713_v62 = vsel %vm589_vm7, %v710_v60, %v701_v4  ;;  %v712_v63 = vsel %vm589_vm7, %v705_v59, %v699_v61 }
 0x206   : > { %v717_v0 = vsub.f32 %v637_v44, %v713_v62  ;;  %v716_v1 = vsub.f32 %v636_v38, %v712_v63 }
 0x208   : > { %v719_v2 = vand.u32 2147483647, %v717_v0  ;;  %v718_v3 = vand.u32 2147483647, %v716_v1 }
 0x20a   : > { %v721_v6 = vsel %vm715_vm13, %v719_v2, 0.0  ;;  %v720_v7 = vsel %vm715_vm13, %v718_v3, 0.0 }
 0x20b   : > { %724 = vadd.xlane.f32.xlu1 %v721_v6  ;;  %722 = vadd.xlane.f32.xlu0 %v720_v7 }
 0x20c   : > { %1147 = shalt.err (!%p1144_p5)
}
 0x20d   : > { %s1148_s19 = scalar_lea.hbm %s1435_s13, 256  ;;  %s1152_s28 = scalar_lea.hbm %s1530_s4, 512 }
 0x20e   : > { %p1149_p6 = scmp.ne.s32.totalorder %s1435_s13, %s1148_s19  ;;  %p1153_p10 = scmp.lt.s32.totalorder %s1435_s13, %s1530_s4 }
 0x20f   : > { %p1154_p11 = scmp.lt.s32.totalorder %s1152_s28, %s1148_s19 }
 0x210   : > { %p1150_p7 = pnand %p1149_p6, %p1299_p4 }
 0x211   : > { %p1155_p12 = por %p1154_p11, %p1153_p10 }
 0x212   : > { %p1151_p9 = pneg %p1150_p7 }
 0x214   : > { %p1156_p13 = pnand %p1155_p12, %p1151_p9 }
 0x216   : > { %1159 = shalt.err (!%p1156_p13)
}
 0x217   : > { %s1222_s12 = smov 128   ;;  %s1223_s15 = smov 8   ;;  %vm387_vm14 = vcmask 7168   ;;  %vm390_vm15 = vcmask 15360   ;;  %vm396_vm0 = vcmask 31744   ;;  %vm393_vm1 = vcmask 23552  }
 0x218   : > { %1059 = dma.vmem_to_hbm [thread:$0]  (%p1299_p4), %s1437_s8, 256, %s1435_s13, %s1441_s14, %s1222_s12, %s1222_s12, %s1223_s15   ;;  %vm399_vm2 = vcmask 39936   ;;  %vm402_vm3 = vcmask 48128   ;;  %vm405_vm4 = vcmask 56320   ;;  %vm408_vm5 = vcmask 64512  }
 0x219   : > { %s344_s13 = scalar_lea.vmem %s1531_s5, %s1324_s16  ;;  %s353_s17 = scalar_lea.vmem %s1532_s6, %s1324_s16 }
 0x231   : > { %v368_v58 = vpop.xlane.xlu0 %367 }
 0x235   : > { %v372_v8 = vpop.xlane.xlu0 %371 }
 0x236   : > { %v366_v9 = vpop.xlane.xlu1 %365 }
 0x237   : > { %v388_v22 = vsel %vm387_vm14, %v366_v9, %v372_v8 }
 0x239   : > { %v729_v11 = vpop.xlane.xlu0 %728 }
 0x23a   : > { %v374_v12 = vpop.xlane.xlu1 %373 }
 0x23b   : > { %v389_v14 = vsel %vm387_vm14, %v368_v58, %v374_v12 }
 0x23d   : > { %v735_v15 = vpop.xlane.xlu0 %734 }
 0x23e   : > { %v750_v16 = vsel %vm387_vm14, %v729_v11, %v735_v15  ;;  %v380_v17 = vpop.xlane.xlu1 %379 }
 0x23f   : > { %v392_v18 = vsel %vm390_vm15, %v389_v14, %v380_v17 }
 0x241   : > { %v378_v19 = vpop.xlane.xlu0 %377 }
 0x242   : > { %v386_v20 = vpop.xlane.xlu1 %385  ;;  %v391_v28 = vsel %vm390_vm15, %v388_v22, %v378_v19 }
 0x243   : > { %v395_v21 = vsel %vm393_vm1, %v392_v18, %v386_v20 }
 0x244   : > { %v398_v23 = vsel %vm396_vm0, %v395_v21, 0.0 }
 0x245   : > { %v401_v10 = vsel %vm399_vm2, %v398_v23, 0.0  ;;  %v741_v24 = vpop.xlane.xlu0 %740 }
 0x246   : > { %v404_v25 = vsel %vm402_vm3, %v401_v10, 0.0  ;;  %v752_v26 = vsel %vm390_vm15, %v750_v16, %v741_v24  ;;  %v731_v27 = vpop.xlane.xlu1 %730 }
 0x247   : > { %v407_v29 = vsel %vm405_vm4, %v404_v25, 0.0 }
 0x248   : > { %410 = vst.msk [vmem:[%s344_s13 + $0x8] sm:$0xff] %vm408_vm5, %v407_v29 }
 0x249   : > { %v384_v30 = vpop.xlane.xlu0 %383 }
 0x24a   : > { %v394_v31 = vsel %vm393_vm1, %v391_v28, %v384_v30  ;;  %v743_v32 = vpop.xlane.xlu1 %742 }
 0x24b   : > { %v397_v33 = vsel %vm396_vm0, %v394_v31, 0.0 }
 0x24c   : > { %v400_v34 = vsel %vm399_vm2, %v397_v33, 0.0 }
 0x24d   : > { %v403_v35 = vsel %vm402_vm3, %v400_v34, 0.0  ;;  %v747_v13 = vpop.xlane.xlu0 %746 }
 0x24e   : > { %v406_v36 = vsel %vm405_vm4, %v403_v35, 0.0  ;;  %v754_v37 = vsel %vm393_vm1, %v752_v26, %v747_v13  ;;  %v749_v38 = vpop.xlane.xlu1 %748 }
 0x24f   : > { %409 = vst.msk [vmem:[%s344_s13] sm:$0xff] %vm408_vm5, %v406_v36 }
 0x252   : > { %v737_v39 = vpop.xlane.xlu1 %736 }
 0x253   : > { %v751_v40 = vsel %vm387_vm14, %v731_v27, %v737_v39 }
 0x254   : > { %v753_v41 = vsel %vm390_vm15, %v751_v40, %v743_v32 }
 0x255   : > { %v755_v42 = vsel %vm393_vm1, %v753_v41, %v749_v38 }
 0x294   : > { %v725_v43 = vpop.xlane.xlu1 %724  ;;  %v723_v44 = vpop.xlane.xlu0 %722 }
 0x295   : > { %v757_v45 = vsel %vm396_vm0, %v755_v42, %v725_v43  ;;  %v756_v46 = vsel %vm396_vm0, %v754_v37, %v723_v44 }
 0x296   : > { %v759_v47 = vsel %vm399_vm2, %v757_v45, 0.0  ;;  %v758_v48 = vsel %vm399_vm2, %v756_v46, 0.0 }
 0x297   : > { %v761_v49 = vsel %vm402_vm3, %v759_v47, 0.0  ;;  %v760_v50 = vsel %vm402_vm3, %v758_v48, 0.0 }
 0x298   : > { %v763_v51 = vsel %vm405_vm4, %v761_v49, 0.0  ;;  %v762_v52 = vsel %vm405_vm4, %v760_v50, 0.0 }
 0x299   : > { %765 = vst.msk [vmem:[%s353_s17 + $0x8] sm:$0xff] %vm408_vm5, %v763_v51  ;;  %764 = vst.msk [vmem:[%s353_s17] sm:$0xff] %vm408_vm5, %v762_v52 }
 0x29a PF: > { %p1065_p4 = scmp.ge.s32.totalorder %s1210_s26, 2  ;;  %s820_s16 = sand.u32 1, %s1190_s21  }
 0x29b   : > { %s821_s18 = scalar_lea.sflag [#allocation3], %s820_s16 }
 0x29c   : > { %p1062_p0 = pnand %p1065_p4, %p1306_p8 }
 0x29e   : > { %p1063_p1 = pneg %p1062_p0 }
 0x2a0   : > { %1185 = dma.done.wait (%p1063_p1), %s821_s18, 256  }
 0x2a1   : > { %1187 = vsyncadd (%p1063_p1), %s821_s18, 4294967040  ;;  %s20_s26 = sadd.s32 1, %s1210_s26   ;;  %s1535_s21 = smov %s1194_s22 }
 0x2a2   : > { %p17_p2 = scmp.ge.s32.totalorder %s20_s26, 4   ;;  %s1536_s22 = smov %s1198_s23 }
 0x2a3   : > { %s1537_s23 = smov %s1312_s10  ;;  %s1538_s24 = smov %s1206_s25 }
 0x2a4   : > { %s1539_s25 = smov %s1541_s29  ;;  %19 = sbr.rel (!%p17_p2) target bundleno = 4 (0x4), region = 98 }
 0x2a9   :  { %850 = vsyncpa [#allocation3], 1 }
 0x2aa   :  { %852 = vsyncpa [#allocation3 + $0x1], 1 }

</bundles_post_ra>
